<compile_context>
chip_gen: v6e
topology: v6e:2x2x1
jax: 0.10.0
libtpu: 0.0.40
codegen_flags: <defaults>
</compile_context>

<pallas_src>
import functools

import jax
import jax.numpy as jnp
from jax.experimental import pallas as pl
from jax.experimental.pallas import tpu as pltpu


def _se_kernel(x_ref, e_ref, w1_ref, w2_ref, o_ref):
    # x_ref : (tb, c*L)   lane-dense block of the flattened input
    # e_ref : (c, c*L)    constant 0/1 channel-expansion matrix (x dtype)
    # w1_ref: (c//r, c)   PyTorch Linear weight (out, in) of fc[0]
    # w2_ref: (c, c//r)   PyTorch Linear weight (out, in) of fc[2]
    # o_ref : (tb, c*L)
    cl = x_ref.shape[-1]
    c = e_ref.shape[0]
    inv_L = 1.0 / float(cl // c)

    x = x_ref[...]
    e = e_ref[...]

    # --- squeeze: per-channel mean as an MXU contraction over the lane axis ---
    y = jax.lax.dot_general(
        x, e, dimension_numbers=(((1,), (1,)), ((), ())),
        preferred_element_type=jnp.float32) * inv_L                   # (tb, c) f32

    # --- excitation: Linear -> ReLU -> Linear -> Sigmoid ----------------------
    # Weights stay in native dtype; only the tiny activations are cast to match.
    h = jax.lax.dot_general(
        y.astype(w1_ref.dtype), w1_ref[...],
        dimension_numbers=(((1,), (1,)), ((), ())),
        preferred_element_type=jnp.float32)                           # (tb, c//r)
    h = jnp.maximum(h, 0.0)
    s = jax.lax.dot_general(
        h.astype(w2_ref.dtype), w2_ref[...],
        dimension_numbers=(((1,), (1,)), ((), ())),
        preferred_element_type=jnp.float32)                           # (tb, c)
    s = jax.nn.sigmoid(s)

    # --- expand + scale: s:(tb,c) -> (tb,c*L) via the 0/1 matrix (one-hot
    #     contraction copies values exactly; no in-kernel reshape of the tile) -
    s_wide = jax.lax.dot_general(
        s.astype(e.dtype), e,
        dimension_numbers=(((1,), (0,)), ((), ())),
        preferred_element_type=x.dtype)                               # (tb, c*L)
    o_ref[...] = (x * s_wide).astype(o_ref.dtype)


def _sublane(itemsize):
    return 16 if itemsize == 2 else (32 if itemsize == 1 else 8)


def _padded_bytes(shape, itemsize):
    """VMEM footprint of one buffer, with last dim padded to 128 lanes and the
    second-minor dim padded to a sublane multiple."""
    sub = _sublane(itemsize)
    if len(shape) == 0:
        return itemsize
    if len(shape) == 1:
        rows, cols, lead = 1, shape[0], 1
    else:
        rows, cols = shape[-2], shape[-1]
        lead = 1
        for d in shape[:-2]:
            lead *= d
    return lead * (pl.cdiv(rows, sub) * sub) * (pl.cdiv(cols, 128) * 128) * itemsize


def _vmem_budget_bytes():
    """Generation-aware VMEM budget (v7x: 64 MiB total; v5e/v6e: 128 MiB)."""
    cap = 64 << 20  # conservative default = v7x
    try:
        cap = int(getattr(pltpu.get_tpu_info(), "vmem_capacity_bytes", cap))
    except Exception:
        pass
    return int(min(cap * 0.65, 96 << 20))


def _pick_batch_block(b, cl, itemsize, weight_bytes, budget_bytes):
    """Largest sublane-aligned tb with 2 in-bufs + 2 out-bufs + weights under the
    budget, capped so the batch grid has >= 2 steps when b is large enough
    (lets the 'parallel' axis shard across v7x's 2 TensorCores)."""
    sub = _sublane(itemsize)
    row_bytes = (pl.cdiv(cl, 128) * 128) * itemsize
    avail = max(budget_bytes - 2 * weight_bytes - (4 << 20), 4 * row_bytes * sub)
    tb = int(avail // (4 * row_bytes))             # 2 in + 2 out double buffers
    if b >= 2 * sub:
        tb = min(tb, pl.cdiv(b, 2))                # >= 2 grid steps
    tb = max(1, min(tb, b))
    if tb < b:
        tb = min(b, max((tb // sub) * sub, sub))   # sublane-aligned partial block
    return tb


@functools.partial(jax.jit, static_argnames=("block_b", "donate_x"))
def se_layer(x, w1, w2, block_b=None, donate_x=False):
    """x: (b, c, L); w1: (c//r, c); w2: (c, c//r) -- PyTorch Linear weight layout."""
    b, c, L = x.shape
    hidden = w1.shape[0]
    cl = c * L
    itemsize = x.dtype.itemsize
    sub = _sublane(itemsize)

    # Constant 0/1 channel-expansion matrix E[i, k] = (k // L == i), x dtype.
    ch = jax.lax.broadcasted_iota(jnp.int32, (c, cl), 0)
    pos = jax.lax.broadcasted_iota(jnp.int32, (c, cl), 1) // L
    e_mat = (ch == pos).astype(x.dtype)

    weight_bytes = (_padded_bytes((c, cl), itemsize)
                    + _padded_bytes(tuple(w1.shape), w1.dtype.itemsize)
                    + _padded_bytes(tuple(w2.shape), w2.dtype.itemsize))
    budget = _vmem_budget_bytes()

    if block_b is not None:
        tb = max(1, min(int(block_b), b))
        if tb < b:
            tb = min(b, pl.cdiv(tb, sub) * sub)    # keep second-minor sublane-aligned
    else:
        tb = _pick_batch_block(b, cl, itemsize, weight_bytes, budget)

    block_bytes = _padded_bytes((tb, cl), itemsize)
    vmem_limit = int(max(min(4 * block_bytes + 2 * weight_bytes + (4 << 20), budget),
                         16 << 20))

    x_flat = x.reshape(b, cl)                      # free for contiguous NCW layout
    grid = (pl.cdiv(b, tb),)                       # ragged last block is fine

    out_flat = pl.pallas_call(
        _se_kernel,
        out_shape=jax.ShapeDtypeStruct((b, cl), x.dtype),
        grid=grid,
        in_specs=[
            pl.BlockSpec((tb, cl), lambda i: (i, 0)),
            pl.BlockSpec((c, cl), lambda i: (0, 0)),
            pl.BlockSpec((hidden, c), lambda i: (0, 0)),
            pl.BlockSpec((c, hidden), lambda i: (0, 0)),
        ],
        out_specs=pl.BlockSpec((tb, cl), lambda i: (i, 0)),
        compiler_params=pltpu.CompilerParams(
            dimension_semantics=("parallel",),
            vmem_limit_bytes=vmem_limit,
        ),
        input_output_aliases=({0: 0} if donate_x else {}),
    )(x_flat, e_mat, w1, w2)

    return out_flat.reshape(b, c, L)


def se_layer_ref(x, w1, w2):
    y = jnp.mean(x, axis=-1)
    h = jnp.maximum(y @ w1.T, 0.0)
    s = jax.nn.sigmoid(h @ w2.T)
    return x * s[:, :, None]


if __name__ == "__main__":
    # channel=64, reduction=16 -> hidden=4; b=16 so the default block picker
    # yields a real 2-step pipelined batch grid (tb=8).
    b, c, L, reduction = 16, 64, 16, 16
    hidden = c // reduction

    key = jax.random.PRNGKey(0)
    kx, k1, k2 = jax.random.split(key, 3)
    x = jax.random.normal(kx, (b, c, L), dtype=jnp.float32)
    # PyTorch Linear weight layout: (out_features, in_features)
    w1 = jax.random.normal(k1, (hidden, c), dtype=jnp.float32) * 0.1
    w2 = jax.random.normal(k2, (c, hidden), dtype=jnp.float32) * 0.1

    out = se_layer(x, w1, w2)
    out = jax.block_until_ready(out)

    ref = se_layer_ref(x, w1, w2)
    assert out.shape == (b, c, L)
    # MXU-based mean/expand may differ from the VPU reference in the last bits.
    assert jnp.allclose(out, ref, atol=1e-4, rtol=1e-4), float(jnp.max(jnp.abs(out - ref)))
    print("KERNEL_OK")
</pallas_src>

<mosaic_0001>
module attributes {stable_mosaic.version = 11 : i64} {
  func.func @_se_kernel(%arg0: i32, %arg1: memref<8x1024xf32, #tpu.memory_space<vmem>>, %arg2: memref<64x1024xf32, #tpu.memory_space<vmem>>, %arg3: memref<4x64xf32, #tpu.memory_space<vmem>>, %arg4: memref<64x4xf32, #tpu.memory_space<vmem>>, %arg5: memref<8x1024xf32, #tpu.memory_space<vmem>>) attributes {dimension_semantics = [#tpu.dimension_semantics<parallel>], iteration_bounds = array<i64: 2>, scalar_prefetch = 0 : i64, scratch_operands = 0 : i64, tpu.core_type = #tpu.core_type<tc>, window_params = [{transform_indices = @transform_0, window_bounds = array<i64: 8, 1024>}, {pipeline_mode = #tpu.pipeline_mode<synchronous>, transform_indices = @transform_1, window_bounds = array<i64: 64, 1024>}, {pipeline_mode = #tpu.pipeline_mode<synchronous>, transform_indices = @transform_2, window_bounds = array<i64: 4, 64>}, {pipeline_mode = #tpu.pipeline_mode<synchronous>, transform_indices = @transform_3, window_bounds = array<i64: 64, 4>}, {transform_indices = @transform_4, window_bounds = array<i64: 8, 1024>}]} {
    %c0 = arith.constant 0 : index
    %c0_0 = arith.constant 0 : index
    %0 = vector.load %arg1[%c0, %c0_0] : memref<8x1024xf32, #tpu.memory_space<vmem>>, vector<8x1024xf32>
    %c0_1 = arith.constant 0 : index
    %c0_2 = arith.constant 0 : index
    %1 = vector.load %arg2[%c0_1, %c0_2] : memref<64x1024xf32, #tpu.memory_space<vmem>>, vector<64x1024xf32>
    %cst = arith.constant dense<0.000000e+00> : vector<8x64xf32>
    %2 = tpu.matmul %0, %1, %cst {dimension_numbers = #tpu.dot_dimension_numbers<[1], [1], [0], [0], [0, 0, 1, 0], [], []>} : vector<8x1024xf32>, vector<64x1024xf32>, vector<8x64xf32> -> vector<8x64xf32>
    %cst_3 = arith.constant 6.250000e-02 : f32
    %3 = vector.broadcast %cst_3 : f32 to vector<8x64xf32>
    %4 = arith.mulf %2, %3 : vector<8x64xf32>
    %c0_4 = arith.constant 0 : index
    %c0_5 = arith.constant 0 : index
    %5 = vector.load %arg3[%c0_4, %c0_5] : memref<4x64xf32, #tpu.memory_space<vmem>>, vector<4x64xf32>
    %cst_6 = arith.constant dense<0.000000e+00> : vector<8x4xf32>
    %6 = tpu.matmul %4, %5, %cst_6 {dimension_numbers = #tpu.dot_dimension_numbers<[1], [1], [0], [0], [0, 0, 1, 0], [], []>} : vector<8x64xf32>, vector<4x64xf32>, vector<8x4xf32> -> vector<8x4xf32>
    %cst_7 = arith.constant 0.000000e+00 : f32
    %7 = vector.broadcast %cst_7 : f32 to vector<8x4xf32>
    %8 = arith.maximumf %6, %7 : vector<8x4xf32>
    %c0_8 = arith.constant 0 : index
    %c0_9 = arith.constant 0 : index
    %9 = vector.load %arg4[%c0_8, %c0_9] : memref<64x4xf32, #tpu.memory_space<vmem>>, vector<64x4xf32>
    %cst_10 = arith.constant dense<0.000000e+00> : vector<8x64xf32>
    %10 = tpu.matmul %8, %9, %cst_10 {dimension_numbers = #tpu.dot_dimension_numbers<[1], [1], [0], [0], [0, 0, 1, 0], [], []>} : vector<8x4xf32>, vector<64x4xf32>, vector<8x64xf32> -> vector<8x64xf32>
    %11 = arith.negf %10 : vector<8x64xf32>
    %12 = math.exp %11 : vector<8x64xf32>
    %cst_11 = arith.constant 1.000000e+00 : f32
    %13 = vector.broadcast %cst_11 : f32 to vector<8x64xf32>
    %14 = arith.addf %13, %12 : vector<8x64xf32>
    %15 = arith.divf %13, %14 : vector<8x64xf32>
    %cst_12 = arith.constant dense<0.000000e+00> : vector<8x1024xf32>
    %16 = tpu.matmul %15, %1, %cst_12 {dimension_numbers = #tpu.dot_dimension_numbers<[1], [0], [0], [1], [0, 0, 1, 1], [], []>} : vector<8x64xf32>, vector<64x1024xf32>, vector<8x1024xf32> -> vector<8x1024xf32>
    %17 = arith.mulf %0, %16 : vector<8x1024xf32>
    %c0_13 = arith.constant 0 : index
    %c0_14 = arith.constant 0 : index
    %18 = vector.load %arg5[%c0_13, %c0_14] : memref<8x1024xf32, #tpu.memory_space<vmem>>, vector<8x1024xf32>
    tpu.vector_store %arg5[%c0_13, %c0_14], %17 {strides = array<i32>} : memref<8x1024xf32, #tpu.memory_space<vmem>>, vector<8x1024xf32>,
    return
  }
  func.func @transform_0(%arg0: i32) -> (i32, i32) {
    %c0_i32 = arith.constant 0 : i32
    %c0_i32_0 = arith.constant 0 : i32
    return %arg0, %c0_i32 : i32, i32
  }
  func.func @transform_1(%arg0: i32) -> (i32, i32) {
    %c0_i32 = arith.constant 0 : i32
    %c0_i32_0 = arith.constant 0 : i32
    %c0_i32_1 = arith.constant 0 : i32
    return %c0_i32, %c0_i32_0 : i32, i32
  }
  func.func @transform_2(%arg0: i32) -> (i32, i32) {
    %c0_i32 = arith.constant 0 : i32
    %c0_i32_0 = arith.constant 0 : i32
    %c0_i32_1 = arith.constant 0 : i32
    return %c0_i32, %c0_i32_0 : i32, i32
  }
  func.func @transform_3(%arg0: i32) -> (i32, i32) {
    %c0_i32 = arith.constant 0 : i32
    %c0_i32_0 = arith.constant 0 : i32
    %c0_i32_1 = arith.constant 0 : i32
    return %c0_i32, %c0_i32_0 : i32, i32
  }
  func.func @transform_4(%arg0: i32) -> (i32, i32) {
    %c0_i32 = arith.constant 0 : i32
    %c0_i32_0 = arith.constant 0 : i32
    return %arg0, %c0_i32 : i32, i32
  }
}

</mosaic_0001>

<bundles_post_ra>
// kernel: se_layer.1
= control target key start
LH: loop header
LB: loop body
LE: loop exit
PB: predicated region body
PF: predicated region fallthrough
CT: control target
= control target key end

     0   :  { %s1213_s15 = smov 0   ;;  %s1784_s0 = inlined_call_operand.vmem [shape: f32[16,1024], index: 0, kind: input, shape index: {}]   ;;  %s1785_s1 = inlined_call_operand.vmem [shape: f32[64,1024], index: 1, kind: input, shape index: {}]   ;;  %s1786_s2 = inlined_call_operand.vmem [shape: f32[4,64], index: 2, kind: input, shape index: {}]   ;;  %s1787_s3 = inlined_call_operand.vmem [shape: f32[64,4], index: 3, kind: input, shape index: {}]   ;;  %s1788_s4 = inlined_call_operand.vmem [shape: f32[16,1024], index: 4, kind: output, shape index: {}]  }
   0x1 LB: > { %s1100_s16 = sadd.s32 4294967295, %s1184_s15   ;;  %p1104_p0 = scmp.ge.s32.totalorder %s1184_s15, 1  ;;  %s1184_s15 = sphi %s1213_s15, %s14_s15  }
   0x2   : > { %p162_p1 = scmp.lt.s32.totalorder %s1184_s15, 3 }
   0x4   : > { %p163_p2 = pnand %p1104_p0, %p162_p1 }
   0x6   : > { %166 = sbr.rel (%p163_p2) target bundleno = 925 (0x39d), region = 36 }
   0xb   : > { %v1224_v0 = vld [vmem:[%s1785_s1 + $0x1c8] sm:$0xff]  ;;  %v1229_v1 = vld [vmem:[%s1785_s1 + $0x1d8] sm:$0xff]  ;;  %v1234_v2 = vld [vmem:[%s1785_s1 + $0x1c0] sm:$0xff]  ;;  %p188_p3 = scmp.lt.s32.totalorder %s1100_s16, 1  ;;  %vm552_vm0 = vcmask 523264   ;;  %vm1187_vm1 = vmmov 0  }
   0xc   : > { %286 = vmatprep.subr.mxu0 %v1224_v0  ;;  %356 = vmatprep.subr.mxu1 %v1229_v1  ;;  %v1241_v3 = vld [vmem:[%s1785_s1 + $0x1d0] sm:$0xff]  ;;  %v1246_v4 = vld [vmem:[%s1785_s1 + $0x188] sm:$0xff]  ;;  %v1251_v5 = vld [vmem:[%s1785_s1 + $0x198] sm:$0xff]  ;;  %vm638_vm2 = vcmask 31744  }
   0xd   : > { %287 = vmatpush1.xpose.msra.mxu0 %v1234_v2  ;;  %357 = vmatpush1.xpose.msra.mxu1 %v1241_v3  ;;  %s1853_s16 = smov (!%p188_p3, %s1100_s16), 1  ;;  %v1262_v6 = vld [vmem:[%s1785_s1 + $0x180] sm:$0xff]  ;;  %v1267_v7 = vld [vmem:[%s1785_s1 + $0x190] sm:$0xff]  ;;  %v1272_v8 = vld [vmem:[%s1785_s1 + $0x148] sm:$0xff] }
   0xe   : > { %288 = vmatprep.subr.mxu0 %v1246_v4  ;;  %358 = vmatprep.subr.mxu1 %v1251_v5  ;;  %v1277_v9 = vld [vmem:[%s1785_s1 + $0x158] sm:$0xff]  ;;  %s1127_s11 = sshll.u32 %s1853_s16, 6  ;;  %v1287_v10 = vld [vmem:[%s1785_s1 + $0x140] sm:$0xff]  ;;  %v1292_v11 = vld [vmem:[%s1785_s1 + $0x150] sm:$0xff] }
   0xf   : > { %s1299_s20 = scalar_lea.vmem %s1784_s0, %s1127_s11  ;;  %v1304_v12 = vld [vmem:[%s1785_s1 + $0x108] sm:$0xff]  ;;  %v1309_v13 = vld [vmem:[%s1785_s1 + $0x118] sm:$0xff]  ;;  %v1321_v15 = vld [vmem:[%s1785_s1 + $0x100] sm:$0xff]  ;;  %s197_s8 = scalar_lea.vmem %s1788_s4, %s1127_s11 }
  0x10   : > { %v1314_v14 = vld [vmem:[%s1299_s20 + $0x8] sm:$0xff]  ;;  %v1326_v16 = vld [vmem:[%s1785_s1 + $0x110] sm:$0xff]  ;;  %v1329_v17 = vld [vmem:[%s1299_s20 + $0x18] sm:$0xff] }
  0x11   : > { %289 = vmatpush1.xpose.msra.mxu0 %v1262_v6  ;;  %359 = vmatpush1.xpose.msra.mxu1 %v1267_v7  ;;  %1810 = vst [vmem:[#allocation2_spill] sm:$0xff] %v1314_v14  ;;  %1811 = vst [vmem:[#allocation3_spill] sm:$0xff] %v1329_v17  ;;  %v1334_v18 = vld [vmem:[%s1785_s1 + $0xc8] sm:$0xff]  ;;  %v1339_v19 = vld [vmem:[%s1785_s1 + $0xd8] sm:$0xff] }
  0x12   : > { %290 = vmatprep.subr.mxu0 %v1272_v8  ;;  %360 = vmatprep.subr.mxu1 %v1277_v9  ;;  %v1350_v20 = vld [vmem:[%s1785_s1 + $0xc0] sm:$0xff]  ;;  %v1355_v21 = vld [vmem:[%s1785_s1 + $0xd0] sm:$0xff]  ;;  %v1360_v22 = vld [vmem:[%s1785_s1 + $0x88] sm:$0xff] }
  0x13   : > { %334 = vmatprep.mubr.f32.mxu0 %v1314_v14  ;;  %404 = vmatprep.mubr.f32.mxu1 %v1329_v17  ;;  %v1365_v23 = vld [vmem:[%s1785_s1 + $0x98] sm:$0xff]  ;;  %v1374_v24 = vld [vmem:[%s1785_s1 + $0x80] sm:$0xff]  ;;  %v1379_v25 = vld [vmem:[%s1785_s1 + $0x90] sm:$0xff] }
  0x14   : > { %v1384_v26 = vld [vmem:[%s1785_s1 + $0x48] sm:$0xff]  ;;  %v1389_v27 = vld [vmem:[%s1785_s1 + $0x58] sm:$0xff]  ;;  %v1398_v28 = vld [vmem:[%s1785_s1 + $0x40] sm:$0xff] }
  0x15   : > { %291 = vmatpush1.xpose.msra.mxu0 %v1287_v10  ;;  %361 = vmatpush1.xpose.msra.mxu1 %v1292_v11  ;;  %v1403_v29 = vld [vmem:[%s1785_s1 + $0x50] sm:$0xff]  ;;  %v1408_v30 = vld [vmem:[%s1785_s1 + $0x8] sm:$0xff]  ;;  %v1413_v31 = vld [vmem:[%s1785_s1 + $0x18] sm:$0xff] }
  0x16   : > { %292 = vmatprep.subr.mxu0 %v1304_v12  ;;  %362 = vmatprep.subr.mxu1 %v1309_v13  ;;  %v1422_v32 = vld [vmem:[%s1785_s1] sm:$0xff]  ;;  %v1427_v33 = vld [vmem:[%s1785_s1 + $0x10] sm:$0xff]  ;;  %v1432_v34 = vld [vmem:[%s1785_s1 + $0x1e8] sm:$0xff] }
  0x17   : > { %v1437_v35 = vld [vmem:[%s1785_s1 + $0x1f8] sm:$0xff]  ;;  %v1442_v36 = vld [vmem:[%s1299_s20] sm:$0xff]  ;;  %v1445_v37 = vld [vmem:[%s1299_s20 + $0x10] sm:$0xff] }
  0x18   : > { %1812 = vst [vmem:[#allocation4_spill] sm:$0xff] %v1442_v36  ;;  %1813 = vst [vmem:[#allocation5_spill] sm:$0xff] %v1445_v37  ;;  %v1452_v38 = vld [vmem:[%s1785_s1 + $0x1e0] sm:$0xff]  ;;  %v1457_v39 = vld [vmem:[%s1785_s1 + $0x1f0] sm:$0xff] }
  0x19   : > { %293 = vmatpush1.xpose.msra.mxu0 %v1321_v15  ;;  %363 = vmatpush1.xpose.msra.mxu1 %v1326_v16  ;;  %v1462_v40 = vld [vmem:[%s1785_s1 + $0x1a8] sm:$0xff]  ;;  %v1467_v41 = vld [vmem:[%s1785_s1 + $0x1b8] sm:$0xff]  ;;  %v1484_v44 = vld [vmem:[%s1785_s1 + $0x1a0] sm:$0xff] }
  0x1a   : > { %294 = vmatprep.subr.mxu0 %v1334_v18  ;;  %364 = vmatprep.subr.mxu1 %v1339_v19  ;;  %v1472_v42 = vld [vmem:[%s1299_s20 + $0x28] sm:$0xff]  ;;  %v1475_v43 = vld [vmem:[%s1299_s20 + $0x38] sm:$0xff]  ;;  %v1489_v45 = vld [vmem:[%s1785_s1 + $0x1b0] sm:$0xff] }
  0x1b   : > { %1814 = vst [vmem:[#allocation6_spill] sm:$0xff] %v1472_v42  ;;  %1815 = vst [vmem:[#allocation7_spill] sm:$0xff] %v1475_v43  ;;  %v1494_v46 = vld [vmem:[%s1785_s1 + $0x168] sm:$0xff]  ;;  %v1499_v47 = vld [vmem:[%s1785_s1 + $0x178] sm:$0xff] }
  0x1c   : > { %1816 = vst [vmem:[#allocation8_spill] sm:$0xff] %v1489_v45  ;;  %1817 = vst [vmem:[#allocation9_spill] sm:$0xff] %v1499_v47  ;;  %v1510_v48 = vld [vmem:[%s1785_s1 + $0x160] sm:$0xff]  ;;  %v1515_v49 = vld [vmem:[%s1785_s1 + $0x170] sm:$0xff] }
  0x1d   : > { %295 = vmatpush1.xpose.msra.mxu0 %v1350_v20  ;;  %365 = vmatpush1.xpose.msra.mxu1 %v1355_v21  ;;  %1818 = vst [vmem:[#allocation10_spill] sm:$0xff] %v1515_v49  ;;  %v1520_v50 = vld [vmem:[%s1785_s1 + $0x128] sm:$0xff]  ;;  %v1525_v51 = vld [vmem:[%s1785_s1 + $0x138] sm:$0xff]  ;;  %v1534_v52 = vld [vmem:[%s1785_s1 + $0x120] sm:$0xff] }
  0x1e   : > { %296 = vmatprep.subr.mxu0 %v1360_v22  ;;  %366 = vmatprep.subr.mxu1 %v1365_v23  ;;  %1819 = vst [vmem:[#allocation11_spill] sm:$0xff] %v1525_v51  ;;  %v1539_v53 = vld [vmem:[%s1785_s1 + $0x130] sm:$0xff]  ;;  %v1544_v54 = vld [vmem:[%s1785_s1 + $0xe8] sm:$0xff]  ;;  %v1549_v55 = vld [vmem:[%s1785_s1 + $0xf8] sm:$0xff] }
  0x1f   : > { %1820 = vst [vmem:[#allocation12_spill] sm:$0xff] %v1539_v53  ;;  %1821 = vst [vmem:[#allocation13_spill] sm:$0xff] %v1549_v55  ;;  %v1558_v56 = vld [vmem:[%s1785_s1 + $0xe0] sm:$0xff]  ;;  %v1563_v57 = vld [vmem:[%s1785_s1 + $0xf0] sm:$0xff] }
  0x20   : > { %1822 = vst [vmem:[#allocation14_spill] sm:$0xff] %v1563_v57  ;;  %v1568_v58 = vld [vmem:[%s1785_s1 + $0xa8] sm:$0xff]  ;;  %v1573_v59 = vld [vmem:[%s1785_s1 + $0xb8] sm:$0xff]  ;;  %v1582_v60 = vld [vmem:[%s1785_s1 + $0xa0] sm:$0xff] }
  0x21   : > { %297 = vmatpush1.xpose.msra.mxu0 %v1374_v24  ;;  %367 = vmatpush1.xpose.msra.mxu1 %v1379_v25  ;;  %1823 = vst [vmem:[#allocation15_spill] sm:$0xff] %v1573_v59  ;;  %v1587_v61 = vld [vmem:[%s1785_s1 + $0xb0] sm:$0xff]  ;;  %v1592_v62 = vld [vmem:[%s1785_s1 + $0x68] sm:$0xff]  ;;  %v1597_v63 = vld [vmem:[%s1785_s1 + $0x78] sm:$0xff] }
  0x22   : > { %298 = vmatprep.subr.mxu0 %v1384_v26  ;;  %368 = vmatprep.subr.mxu1 %v1389_v27  ;;  %1824 = vst [vmem:[#allocation16_spill] sm:$0xff] %v1587_v61  ;;  %1825 = vst [vmem:[#allocation17_spill] sm:$0xff] %v1597_v63  ;;  %v1611_v17 = vld [vmem:[%s1785_s1 + $0x70] sm:$0xff]  ;;  %v1630_v14 = vld [vmem:[%s1785_s1 + $0x20] sm:$0xff] }
  0x23   : > { %1826 = vst [vmem:[#allocation18_spill] sm:$0xff] %v1611_v17 }
  0x25   : > { %299 = vmatpush1.xpose.msra.mxu0 %v1398_v28  ;;  %369 = vmatpush1.xpose.msra.mxu1 %v1403_v29 }
  0x26   : > { %300 = vmatprep.subr.mxu0 %v1408_v30  ;;  %370 = vmatprep.subr.mxu1 %v1413_v31 }
  0x29   : > { %301 = vmatpush1.xpose.msra.mxu0 %v1422_v32  ;;  %371 = vmatpush1.xpose.msra.mxu1 %v1427_v33 }
  0x2a   : > { %426 = vmatprep.subr.mxu0 %v1432_v34  ;;  %496 = vmatprep.subr.mxu1 %v1437_v35 }
  0x2c   : > { %335 = vmatmul.mubr.f32.vlgmr.msra.gmra.mxu0 %v1442_v36  ;;  %405 = vmatmul.mubr.f32.vlgmr.msra.gmra.mxu1 %v1445_v37  ;;  %v1616_v37 = vld [vmem:[%s1785_s1 + $0x28] sm:$0xff]  ;;  %v1635_v36 = vld [vmem:[%s1785_s1 + $0x30] sm:$0xff] }
  0x2d   : > { %427 = vmatpush1.xpose.msra.mxu0 %v1452_v38  ;;  %497 = vmatpush1.xpose.msra.mxu1 %v1457_v39  ;;  %1828 = vst [vmem:[#allocation20_spill] sm:$0xff] %v1635_v36 }
  0x2e   : > { %428 = vmatprep.subr.mxu0 %v1462_v40  ;;  %498 = vmatprep.subr.mxu1 %v1467_v41 }
  0x2f   : > { %474 = vmatprep.mubr.f32.mxu0 %v1472_v42  ;;  %544 = vmatprep.mubr.f32.mxu1 %v1475_v43  ;;  %v1606_v43 = vld [vmem:[%s1785_s1 + $0x60] sm:$0xff]  ;;  %v1621_v42 = vld [vmem:[%s1785_s1 + $0x38] sm:$0xff] }
  0x30   : > { %1827 = vst [vmem:[#allocation19_spill] sm:$0xff] %v1621_v42 }
  0x31   : > { %429 = vmatpush1.xpose.msra.mxu0 %v1484_v44  ;;  %499 = vmatpush1.xpose.msra.mxu1 %v1489_v45 }
  0x32   : > { %430 = vmatprep.subr.mxu0 %v1494_v46  ;;  %500 = vmatprep.subr.mxu1 %v1499_v47 }
  0x35   : > { %431 = vmatpush1.xpose.msra.mxu0 %v1510_v48  ;;  %501 = vmatpush1.xpose.msra.mxu1 %v1515_v49 }
  0x36   : > { %432 = vmatprep.subr.mxu0 %v1520_v50  ;;  %502 = vmatprep.subr.mxu1 %v1525_v51 }
  0x39   : > { %433 = vmatpush1.xpose.msra.mxu0 %v1534_v52  ;;  %503 = vmatpush1.xpose.msra.mxu1 %v1539_v53 }
  0x3a   : > { %434 = vmatprep.subr.mxu0 %v1544_v54  ;;  %504 = vmatprep.subr.mxu1 %v1549_v55 }
  0x3d   : > { %435 = vmatpush1.xpose.msra.mxu0 %v1558_v56  ;;  %505 = vmatpush1.xpose.msra.mxu1 %v1563_v57 }
  0x3e   : > { %436 = vmatprep.subr.mxu0 %v1568_v58  ;;  %506 = vmatprep.subr.mxu1 %v1573_v59 }
  0x41   : > { %437 = vmatpush1.xpose.msra.mxu0 %v1582_v60  ;;  %507 = vmatpush1.xpose.msra.mxu1 %v1587_v61  ;;  %v551_v61 = vld [vmem:[%s1786_s2] sm:$0xf] }
  0x42   : > { %438 = vmatprep.subr.mxu0 %v1592_v62  ;;  %508 = vmatprep.subr.mxu1 %v1597_v63  ;;  %v1640_v63 = vld [vmem:[%s1299_s20 + $0x20] sm:$0xff] }
  0x43   : > { %1829 = vst [vmem:[#allocation21_spill] sm:$0xff] %v1640_v63 }
  0x45   : > { %439 = vmatpush1.xpose.msra.mxu0 %v1606_v43  ;;  %509 = vmatpush1.xpose.msra.mxu1 %v1611_v17  ;;  %v1643_v17 = vld [vmem:[%s1299_s20 + $0x30] sm:$0xff] }
  0x46   : > { %440 = vmatprep.subr.mxu0 %v1616_v37  ;;  %510 = vmatprep.subr.mxu1 %v1621_v42  ;;  %1830 = vst [vmem:[#allocation22_spill] sm:$0xff] %v1643_v17  ;;  %v1186_v42 = vmov 0.0  }
  0x49   : > { %441 = vmatpush1.xpose.msra.mxu0 %v1630_v14  ;;  %511 = vmatpush1.xpose.msra.mxu1 %v1635_v36 }
  0x4a   : > { %1140 = vmatprep.subr.mxu0 %v1186_v42  ;;  %1145 = vmatprep.subr.mxu1 %v1186_v42 }
  0x4c   : > { %475 = vmatmul.mubr.f32.vlgmr.msra.gmra.mxu0 %v1640_v63  ;;  %545 = vmatmul.mubr.f32.vlgmr.msra.gmra.mxu1 %v1643_v17  ;;  %v637_v17 = vld [vmem:[%s1787_s3 + $0x38] sm:$0xff] }
  0x4d   : > { %1141 = vmatpush3.xpose.msk.msra.mxu0 %vm552_vm0, %v551_v61  ;;  %1142 = vmatprep.mubr.msk.f32.mxu0 %vm1187_vm1, %v1186_v42  ;;  %v636_v61 = vld [vmem:[%s1787_s3 + $0x30] sm:$0xff] }
  0x4e   : > { %761 = vmatprep.subr.mxu0 %v1224_v0  ;;  %1161 = vmatprep.mubr.msk.f32.mxu1 %vm1187_vm1, %v1186_v42  ;;  %v635_v0 = vld [vmem:[%s1787_s3 + $0x28] sm:$0xff] }
  0x4f   : > { %1146 = vmatpush3.xpose.msk.msra.mxu1 %vm638_vm2, %v637_v17  ;;  %v634_v17 = vld [vmem:[%s1787_s3 + $0x20] sm:$0xff] }
  0x50   : > { %1147 = vmatprep.subr.mxu1 %v1186_v42 }
  0x53   : > { %1148 = vmatpush3.xpose.msk.msra.mxu1 %vm638_vm2, %v636_v61  ;;  %v633_v61 = vld [vmem:[%s1787_s3 + $0x18] sm:$0xff] }
  0x54   : > { %1149 = vmatprep.subr.mxu1 %v1186_v42 }
  0x57   : > { %1150 = vmatpush3.xpose.msk.msra.mxu1 %vm638_vm2, %v635_v0  ;;  %v632_v0 = vld [vmem:[%s1787_s3 + $0x10] sm:$0xff] }
  0x58   : > { %1151 = vmatprep.subr.mxu1 %v1186_v42 }
  0x5b   : > { %1152 = vmatpush3.xpose.msk.msra.mxu1 %vm638_vm2, %v634_v17  ;;  %v631_v17 = vld [vmem:[%s1787_s3 + $0x8] sm:$0xff] }
  0x5c   : > { %1153 = vmatprep.subr.mxu1 %v1186_v42 }
  0x5f   : > { %1154 = vmatpush3.xpose.msk.msra.mxu1 %vm638_vm2, %v633_v61 }
  0x60   : > { %1155 = vmatprep.subr.mxu1 %v1186_v42 }
  0x63   : > { %1156 = vmatpush3.xpose.msk.msra.mxu1 %vm638_vm2, %v632_v0 }
  0x64   : > { %1157 = vmatprep.subr.mxu1 %v1186_v42 }
  0x67   : > { %1158 = vmatpush3.xpose.msk.msra.mxu1 %vm638_vm2, %v631_v17 }
  0x68   : > { %1159 = vmatprep.subr.mxu1 %v1186_v42 }
  0xec   : > { %v336_v63 = vpop.f32.mrf.mxu0  ;;  %v406_v61 = vpop.f32.mrf.mxu1 }
  0xed   : > { %v407_v57 = vadd.f32 %v406_v61, %v336_v63 }
  0xee   : > { %v338_v36 = vpop.f32.mrf.mxu0  ;;  %v408_v59 = vpop.f32.mrf.mxu1 }
 0x10c   : > { %v476_v55 = vpop.f32.mrf.mxu0  ;;  %v546_v53 = vpop.f32.mrf.mxu1 }
 0x10d   : > { %v477_v51 = vadd.f32 %v476_v55, %v407_v57 }
 0x10e   : > { %v478_v49 = vpop.f32.mrf.mxu0  ;;  %v548_v0 = vpop.f32.mrf.mxu1 }
 0x10f   : > { %v547_v47 = vadd.f32 %v546_v53, %v477_v51 }
 0x111   : > { %v550_v45 = vmul.f32 0.0625, %v547_v47  ;;  %v1851_v47 = vld [vmem:[#allocation7_spill] sm:$0xff] }
 0x113   : > { %1143 = vmatmul.mubr.msk.f32.vlgmr.msra.gmra.mxu0 %vm552_vm0, %v550_v45 }
 0x114   : > { %762 = vmatpush1.msra.mxu0 %v1234_v2  ;;  %809 = vmatprep.mubr.f32.mxu0 %v1186_v42  ;;  %v630_v2 = vld [vmem:[%s1787_s3] sm:$0xff] }
 0x115   : > { %763 = vmatprep.subr.mxu0 %v1246_v4  ;;  %1160 = vmatpush3.xpose.msk.msra.mxu1 %vm638_vm2, %v630_v2 }
 0x116   : > { %764 = vmatpush1.msra.mxu0 %v1262_v6  ;;  %903 = vmatprep.subr.mxu1 %v1432_v34 }
 0x117   : > { %765 = vmatprep.subr.mxu0 %v1272_v8 }
 0x118   : > { %766 = vmatpush1.msra.mxu0 %v1287_v10 }
 0x119   : > { %767 = vmatprep.subr.mxu0 %v1304_v12 }
 0x11a   : > { %768 = vmatpush1.msra.mxu0 %v1321_v15 }
 0x11b   : > { %769 = vmatprep.subr.mxu0 %v1334_v18 }
 0x11c   : > { %770 = vmatpush1.msra.mxu0 %v1350_v20 }
 0x11d   : > { %771 = vmatprep.subr.mxu0 %v1360_v22  ;;  %v1841_v22 = vld [vmem:[#allocation18_spill] sm:$0xff] }
 0x11e   : > { %772 = vmatpush1.msra.mxu0 %v1374_v24  ;;  %v1843_v24 = vld [vmem:[#allocation20_spill] sm:$0xff] }
 0x11f   : > { %773 = vmatprep.subr.mxu0 %v1384_v26 }
 0x120   : > { %774 = vmatpush1.msra.mxu0 %v1398_v28 }
 0x121   : > { %775 = vmatprep.subr.mxu0 %v1408_v30 }
 0x122   : > { %776 = vmatpush1.msra.mxu0 %v1422_v32 }
 0x123   : > { %832 = vmatprep.subr.mxu0 %v1229_v1 }
 0x1d3   : > { %v625_v4 = vpop.f32.mrf.mxu0 }
 0x1d4   : > { %v629_v6 = vmax.f32 %v625_v4, 0.0 }
 0x1d5   : > { %v1144_v8 = vpop.f32.mrf.mxu0 }
 0x1d6   : > { %1162 = vmatmul.mubr.msk.f32.vlgmr.msra.gmra.mxu1 %vm638_vm2, %v629_v6 }
 0x1d7   : > { %904 = vmatpush1.msra.mxu1 %v1452_v38  ;;  %951 = vmatprep.mubr.f32.mxu1 %v1186_v42  ;;  %v1848_v38 = vld [vmem:[#allocation5_spill] sm:$0xff] }
 0x1d8   : > { %905 = vmatprep.subr.mxu1 %v1462_v40 }
 0x1d9   : > { %906 = vmatpush1.msra.mxu1 %v1484_v44  ;;  %v1850_v44 = vld [vmem:[#allocation22_spill] sm:$0xff] }
 0x1da   : > { %907 = vmatprep.subr.mxu1 %v1494_v46 }
 0x1db   : > { %908 = vmatpush1.msra.mxu1 %v1510_v48 }
 0x1dc   : > { %909 = vmatprep.subr.mxu1 %v1520_v50 }
 0x1dd   : > { %910 = vmatpush1.msra.mxu1 %v1534_v52 }
 0x1de   : > { %911 = vmatprep.subr.mxu1 %v1544_v54 }
 0x1df   : > { %912 = vmatpush1.msra.mxu1 %v1558_v56 }
 0x1e0   : > { %913 = vmatprep.subr.mxu1 %v1568_v58 }
 0x1e1   : > { %914 = vmatpush1.msra.mxu1 %v1582_v60 }
 0x1e2   : > { %915 = vmatprep.subr.mxu1 %v1592_v62 }
 0x1e3   : > { %916 = vmatpush1.msra.mxu1 %v1606_v43 }
 0x1e4   : > { %917 = vmatprep.subr.mxu1 %v1616_v37 }
 0x1e5   : > { %918 = vmatpush1.msra.mxu1 %v1630_v14  ;;  %v1837_v14 = vld [vmem:[#allocation14_spill] sm:$0xff] }
 0x296   : > { %v732_v1 = vpop.f32.mrf.mxu1 }
 0x297   : > { %v1120_v10 = vmul.f32 -1.442695, %v732_v1 }
 0x298   : > { %v1163_v12 = vpop.f32.mrf.mxu1 }
 0x299   : > { %1174 = vpow2.f32 %v1120_v10 }
 0x2a6   : > { %v1175_v15 = vpop.eup %1174 }
 0x2a7   : > { %v739_v18 = vadd.f32 1.0, %v1175_v15 }
 0x2a9   : > { %1176 = vrcp.f32 %v739_v18 }
 0x2b6   : > { %v1177_v20 = vpop.eup %1176 }
 0x2b7   : > { %1121 = vmatmul.mubr.msk.f32.vlgmr.msra.gmra.mxu0 %vm552_vm0, %v1177_v20  ;;  %1123 = vmatmul.mubr.msk.f32.vlgmr.msra.gmra.mxu1 %vm552_vm0, %v1177_v20 }
 0x2b8   : > { %833 = vmatpush1.msra.mxu0 %v1241_v3  ;;  %880 = vmatprep.mubr.f32.mxu0 %v1186_v42  ;;  %v1831_v3 = vld [vmem:[#allocation8_spill] sm:$0xff] }
 0x2b9   : > { %834 = vmatprep.subr.mxu0 %v1251_v5  ;;  %v1832_v5 = vld [vmem:[#allocation9_spill] sm:$0xff] }
 0x2ba   : > { %835 = vmatpush1.msra.mxu0 %v1267_v7  ;;  %v1833_v7 = vld [vmem:[#allocation10_spill] sm:$0xff] }
 0x2bb   : > { %836 = vmatprep.subr.mxu0 %v1277_v9  ;;  %v1834_v9 = vld [vmem:[#allocation11_spill] sm:$0xff] }
 0x2bc   : > { %837 = vmatpush1.msra.mxu0 %v1292_v11  ;;  %v1835_v11 = vld [vmem:[#allocation12_spill] sm:$0xff] }
 0x2bd   : > { %838 = vmatprep.subr.mxu0 %v1309_v13  ;;  %v1836_v13 = vld [vmem:[#allocation13_spill] sm:$0xff] }
 0x2be   : > { %839 = vmatpush1.msra.mxu0 %v1326_v16  ;;  %v1838_v16 = vld [vmem:[#allocation15_spill] sm:$0xff] }
 0x2bf   : > { %840 = vmatprep.subr.mxu0 %v1339_v19  ;;  %v1839_v19 = vld [vmem:[#allocation16_spill] sm:$0xff] }
 0x2c0   : > { %841 = vmatpush1.msra.mxu0 %v1355_v21  ;;  %v1840_v21 = vld [vmem:[#allocation17_spill] sm:$0xff] }
 0x2c1   : > { %842 = vmatprep.subr.mxu0 %v1365_v23  ;;  %v1842_v23 = vld [vmem:[#allocation19_spill] sm:$0xff] }
 0x2c2   : > { %843 = vmatpush1.msra.mxu0 %v1379_v25 }
 0x2c3   : > { %844 = vmatprep.subr.mxu0 %v1389_v27  ;;  %v1844_v27 = vld [vmem:[#allocation4_spill] sm:$0xff] }
 0x2c4   : > { %845 = vmatpush1.msra.mxu0 %v1403_v29  ;;  %v1845_v29 = vld [vmem:[#allocation21_spill] sm:$0xff] }
 0x2c5   : > { %846 = vmatprep.subr.mxu0 %v1413_v31 }
 0x2c6   : > { %847 = vmatpush1.msra.mxu0 %v1427_v33  ;;  %v1846_v33 = vld [vmem:[#allocation2_spill] sm:$0xff] }
 0x2c7   : > { %1122 = vmatmul.mubr.msk.f32.vlgmr.msra.gmra.mxu0 %vm552_vm0, %v1177_v20  ;;  %974 = vmatprep.subr.mxu0 %v1437_v35  ;;  %v1847_v35 = vld [vmem:[#allocation6_spill] sm:$0xff] }
 0x2c8   : > { %975 = vmatpush1.msra.mxu0 %v1457_v39  ;;  %1022 = vmatprep.mubr.f32.mxu0 %v1186_v42 }
 0x2c9   : > { %976 = vmatprep.subr.mxu0 %v1467_v41  ;;  %v1849_v41 = vld [vmem:[#allocation3_spill] sm:$0xff] }
 0x2ca   : > { %977 = vmatpush1.msra.mxu0 %v1831_v3 }
 0x2cb   : > { %978 = vmatprep.subr.mxu0 %v1832_v5 }
 0x2cc   : > { %979 = vmatpush1.msra.mxu0 %v1833_v7 }
 0x2cd   : > { %980 = vmatprep.subr.mxu0 %v1834_v9 }
 0x2ce   : > { %981 = vmatpush1.msra.mxu0 %v1835_v11 }
 0x2cf   : > { %982 = vmatprep.subr.mxu0 %v1836_v13 }
 0x2d0   : > { %983 = vmatpush1.msra.mxu0 %v1837_v14 }
 0x2d1   : > { %984 = vmatprep.subr.mxu0 %v1838_v16 }
 0x2d2   : > { %985 = vmatpush1.msra.mxu0 %v1839_v19 }
 0x2d3   : > { %986 = vmatprep.subr.mxu0 %v1840_v21 }
 0x2d4   : > { %987 = vmatpush1.msra.mxu0 %v1841_v22 }
 0x2d5   : > { %988 = vmatprep.subr.mxu0 %v1842_v23 }
 0x2d6   : > { %989 = vmatpush1.msra.mxu0 %v1843_v24 }
 0x2d7   : > { %1124 = vmatmul.mubr.msk.f32.vlgmr.msra.gmra.mxu0 %vm552_vm0, %v1177_v20 }
 0x377   : > { %v811_v25 = vpop.f32.mrf.mxu0  ;;  %v953_v26 = vpop.f32.mrf.mxu1 }
 0x378   : > { %v1029_v28 = vmul.f32 %v811_v25, %v1844_v27  ;;  %v1033_v30 = vmul.f32 %v953_v26, %v1845_v29 }
 0x379   : > { %v813_v31 = vpop.f32.mrf.mxu0  ;;  %v955_v32 = vpop.f32.mrf.mxu1 }
 0x37a   : > { %1037 = vst [vmem:[%s197_s8] sm:$0xff] %v1029_v28  ;;  %1041 = vst [vmem:[%s197_s8 + $0x20] sm:$0xff] %v1033_v30  ;;  %v1030_v34 = vmul.f32 %v813_v31, %v1846_v33  ;;  %v1034_v36 = vmul.f32 %v955_v32, %v1847_v35 }
 0x37c   : > { %1038 = vst [vmem:[%s197_s8 + $0x8] sm:$0xff] %v1030_v34  ;;  %1042 = vst [vmem:[%s197_s8 + $0x28] sm:$0xff] %v1034_v36 }
 0x387   : > { %v882_v37 = vpop.f32.mrf.mxu0 }
 0x388   : > { %v1031_v39 = vmul.f32 %v882_v37, %v1848_v38 }
 0x389   : > { %v884_v40 = vpop.f32.mrf.mxu0 }
 0x38a   : > { %1039 = vst [vmem:[%s197_s8 + $0x10] sm:$0xff] %v1031_v39  ;;  %v1032_v42 = vmul.f32 %v884_v40, %v1849_v41 }
 0x38c   : > { %1040 = vst [vmem:[%s197_s8 + $0x18] sm:$0xff] %v1032_v42 }
 0x397   : > { %v1024_v43 = vpop.f32.mrf.mxu0 }
 0x398   : > { %v1035_v45 = vmul.f32 %v1024_v43, %v1850_v44 }
 0x399   : > { %v1026_v46 = vpop.f32.mrf.mxu0 }
 0x39a   : > { %1043 = vst [vmem:[%s197_s8 + $0x30] sm:$0xff] %v1035_v45  ;;  %v1036_v48 = vmul.f32 %v1026_v46, %v1851_v47 }
 0x39c   : > { %1044 = vst [vmem:[%s197_s8 + $0x38] sm:$0xff] %v1036_v48 }
 0x39d PF: > { %s14_s15 = sadd.s32 1, %s1184_s15  }
 0x39e   : > { %p11_p4 = scmp.ge.s32.totalorder %s14_s15, 4  }
 0x3a0   :  { %13 = sbr.rel (!%p11_p4) target bundleno = 1 (0x1), region = 66 }

</bundles_post_ra>
